<compile_context>
chip_gen: v7x
topology: tpu7x:2x2x1
jax: 0.10.0
libtpu: 0.0.40
codegen_flags: <defaults>
</compile_context>

<pallas_src>
import math
import functools

import jax
import jax.numpy as jnp
import numpy as np
from jax.experimental import pallas as pl
from jax.experimental.pallas import tpu as pltpu


# ----------------------------------------------------------------------------
# Pallas kernel: one batch-chunk (Bt, S, E) per grid step.
# ----------------------------------------------------------------------------
def transformer_kernel(
    x_ref,      # [Bt, S, E]
    pe_ref,     # [S, E]
    wqkv_ref,   # [E, 3E]   columns: q | k | v   (y = x @ w layout)
    wo_ref,     # [E, E]
    w1_ref,     # [E, 4E]
    w2_ref,     # [4E, E]
    vece_ref,   # [6, E]    rows: bo, g1, b1, bf2, g2, b2
    bf1_ref,    # [1, 4E]
    o_ref,      # [Bt, S, E]
    *,
    compute_dtype,
):
    Bt, S, E = x_ref.shape
    M = Bt * S
    fast = np.dtype(compute_dtype) != np.dtype(jnp.float32)

    def mm(a, b):  # MXU matmul: (possibly) low-precision inputs, f32 accumulation
        return jnp.dot(a.astype(compute_dtype), b.astype(compute_dtype),
                       preferred_element_type=jnp.float32)

    vece = vece_ref[...]
    bo, g1, b1, bf2, g2, b2 = (vece[i:i + 1, :] for i in range(6))

    # x += pos_encoder(x)  ==>  x = x + (x + pe) = 2*x + pe
    x_in = x_ref[...]                                              # single load
    x3 = 2.0 * x_in + pe_ref[...][None, :, :]                      # [Bt,S,E] f32
    x2 = x3.reshape(M, E)                                          # [M, E]

    # --- fused QKV projection: one [M,E] x [E,3E] matmul ---------------------
    qkv = mm(x2, wqkv_ref[...])                                    # [M, 3E] f32
    q = qkv[:, 0 * E:1 * E].reshape(Bt, S, E)
    k = qkv[:, 1 * E:2 * E].reshape(Bt, S, E)
    v = qkv[:, 2 * E:3 * E].reshape(Bt, S, E)

    # --- attention: contract last dims directly (no explicit k.T) ------------
    energy = jnp.einsum("bqd,bkd->bqk",
                        q.astype(compute_dtype), k.astype(compute_dtype),
                        preferred_element_type=jnp.float32)        # [Bt,S,S]
    logits = energy * (1.0 / math.sqrt(E))
    m = jnp.max(logits, axis=-1, keepdims=True)
    p = jnp.exp(logits - m)
    denom = jnp.sum(p, axis=-1, keepdims=True)
    if fast:
        attn = p * pl.reciprocal(denom, approx=True)   # EUP vrcp, ~free slot
    else:
        attn = p / denom

    ctx = jnp.einsum("bqk,bkd->bqd",
                     attn.astype(compute_dtype), v.astype(compute_dtype),
                     preferred_element_type=jnp.float32)           # [Bt,S,E]
    att_out = mm(ctx.reshape(M, E), wo_ref[...]) + bo              # [M, E]

    # --- norm1(attention + query), f32 statistics -----------------------------
    h = att_out + x2
    mu = jnp.mean(h, axis=-1, keepdims=True)
    d = h - mu
    var = jnp.mean(d * d, axis=-1, keepdims=True)
    x1 = d * jax.lax.rsqrt(var + 1e-5) * g1 + b1

    # --- feed forward ----------------------------------------------------------
    ff = jnp.maximum(mm(x1, w1_ref[...]) + bf1_ref[...], 0.0)      # [M, 4E]
    ff = mm(ff, w2_ref[...]) + bf2                                 # [M, E]

    # --- norm2(ff + x1) --------------------------------------------------------
    h2 = ff + x1
    mu2 = jnp.mean(h2, axis=-1, keepdims=True)
    d2 = h2 - mu2
    var2 = jnp.mean(d2 * d2, axis=-1, keepdims=True)
    out = d2 * jax.lax.rsqrt(var2 + 1e-5) * g2 + b2

    # TODO(synk): for E not a multiple of 128 the final store is lane-masked;
    # padding E (and all weights) to 128 lanes would make stores lane-dense,
    # at the cost of a wrapper-side slice.  Left unpadded to keep the output
    # shape identical to the module's.
    o_ref[...] = out.reshape(Bt, S, E).astype(o_ref.dtype)


# ----------------------------------------------------------------------------
# Wrapper: batch-chunked grid, constant-index weight specs.
# ----------------------------------------------------------------------------
def _pick_batch_block(B, S, E, vmem_budget_bytes=12 * 1024 * 1024,
                      max_rows=1024):
    """Largest divisor Bt of B such that the big per-step live tensors
    (attention [Bt,S,S], FF activation [Bt,S,4E], a few [Bt,S,E] slabs)
    stay within a conservative VMEM budget and Bt*S <= max_rows."""
    def footprint(bb):
        rows = bb * S
        return 4 * (rows * S            # attention probs
                    + rows * 4 * E      # FF hidden activation
                    + 8 * rows * E)     # x/q/k/v/ctx/residual slabs (f32)

    best = 1
    for bb in range(1, B + 1):
        if B % bb == 0 and bb * S <= max_rows and footprint(bb) <= vmem_budget_bytes:
            best = bb
    return best


@functools.partial(jax.jit, static_argnames=("compute_dtype",))
def simple_transformer(x, pe, wqkv, wo, w1, w2, vec_e, bf1, *,
                       compute_dtype=jnp.float32):
    B, S, E = x.shape
    H = w1.shape[1]                        # 4*E
    Bt = _pick_batch_block(B, S, E)        # rows per grid step = Bt*S
    grid = (B // Bt,)

    kernel = functools.partial(transformer_kernel, compute_dtype=compute_dtype)
    const = lambda shape: pl.BlockSpec(shape, lambda b: tuple(0 for _ in shape))

    return pl.pallas_call(
        kernel,
        out_shape=jax.ShapeDtypeStruct((B, S, E), jnp.float32),
        grid_spec=pltpu.PrefetchScalarGridSpec(
            num_scalar_prefetch=0,
            grid=grid,
            in_specs=[
                pl.BlockSpec((Bt, S, E), lambda b: (b, 0, 0)),   # x
                const((S, E)),       # pe
                const((E, 3 * E)),   # wqkv (fused q|k|v)
                const((E, E)),       # wo
                const((E, H)),       # w1
                const((H, E)),       # w2
                const((6, E)),       # packed per-channel vectors
                const((1, H)),       # bf1
            ],
            out_specs=pl.BlockSpec((Bt, S, E), lambda b: (b, 0, 0)),
        ),
        compiler_params=pltpu.CompilerParams(
            dimension_semantics=("parallel",),      # sharded across TCs on v7x
            vmem_limit_bytes=64 * 1024 * 1024,
        ),
    )(x, pe, wqkv, wo, w1, w2, vec_e, bf1)


# ----------------------------------------------------------------------------
# Deterministic parameter construction (matches the PyTorch module's shapes).
# ----------------------------------------------------------------------------
def make_positional_encoding(embed_size, max_len=100):
    position = jnp.arange(max_len, dtype=jnp.float32)[:, None]
    div_term = jnp.exp(
        jnp.arange(0, embed_size, 2, dtype=jnp.float32)
        * (-math.log(10000.0) / embed_size)
    )
    pe = jnp.zeros((max_len, embed_size), dtype=jnp.float32)
    pe = pe.at[:, 0::2].set(jnp.sin(position * div_term))
    pe = pe.at[:, 1::2].set(jnp.cos(position * div_term))
    return pe  # [max_len, E]


def make_params(key, embed_size):
    E = embed_size
    H = 4 * E
    keys = jax.random.split(key, 10)
    scale = 1.0 / math.sqrt(E)
    scale_h = 1.0 / math.sqrt(H)
    # Linear weights stored already transposed: (in_features, out_features).
    wq = jax.random.uniform(keys[0], (E, E), jnp.float32, -scale, scale)
    wk = jax.random.uniform(keys[1], (E, E), jnp.float32, -scale, scale)
    wv = jax.random.uniform(keys[2], (E, E), jnp.float32, -scale, scale)
    wo = jax.random.uniform(keys[3], (E, E), jnp.float32, -scale, scale)
    bo = jax.random.uniform(keys[4], (1, E), jnp.float32, -scale, scale)
    g1 = jnp.ones((1, E), jnp.float32)
    b1 = jnp.zeros((1, E), jnp.float32)
    w1 = jax.random.uniform(keys[5], (E, H), jnp.float32, -scale, scale)
    bf1 = jax.random.uniform(keys[6], (1, H), jnp.float32, -scale, scale)
    w2 = jax.random.uniform(keys[7], (H, E), jnp.float32, -scale_h, scale_h)
    bf2 = jax.random.uniform(keys[8], (1, E), jnp.float32, -scale_h, scale_h)
    g2 = jnp.ones((1, E), jnp.float32)
    b2 = jnp.zeros((1, E), jnp.float32)
    wqkv = jnp.concatenate([wq, wk, wv], axis=1)            # [E, 3E]
    vec_e = jnp.concatenate([bo, g1, b1, bf2, g2, b2], 0)   # [6, E]
    return wqkv, wo, w1, w2, vec_e, bf1


# ----------------------------------------------------------------------------
# Pure-JAX reference (mirrors the kernel's precision choices via compute_dtype).
# ----------------------------------------------------------------------------
def reference(x, pe, wqkv, wo, w1, w2, vec_e, bf1, *, compute_dtype=jnp.float32):
    E = x.shape[-1]
    bo, g1, b1, bf2, g2, b2 = (vec_e[i:i + 1, :] for i in range(6))
    cd = compute_dtype

    def mm(a, b):
        return jnp.matmul(a.astype(cd), b.astype(cd),
                          preferred_element_type=jnp.float32)

    xx = x + (x + pe[None, :, :])
    q = mm(xx, wqkv[:, :E])
    k = mm(xx, wqkv[:, E:2 * E])
    v = mm(xx, wqkv[:, 2 * E:])
    energy = jnp.einsum("bqd,bkd->bqk", q.astype(cd), k.astype(cd),
                        preferred_element_type=jnp.float32)
    attn = jax.nn.softmax(energy / math.sqrt(E), axis=-1)
    ctx = jnp.einsum("bqk,bkd->bqd", attn.astype(cd), v.astype(cd),
                     preferred_element_type=jnp.float32)
    att_out = mm(ctx, wo) + bo
    h = att_out + xx
    mu = h.mean(-1, keepdims=True)
    var = ((h - mu) ** 2).mean(-1, keepdims=True)
    x1 = (h - mu) / jnp.sqrt(var + 1e-5) * g1 + b1
    ff = jnp.maximum(mm(x1, w1) + bf1, 0.0)
    ff = mm(ff, w2) + bf2
    h2 = ff + x1
    mu2 = h2.mean(-1, keepdims=True)
    var2 = ((h2 - mu2) ** 2).mean(-1, keepdims=True)
    return (h2 - mu2) / jnp.sqrt(var2 + 1e-5) * g2 + b2


if __name__ == "__main__":
    B, S, E = 2, 8, 32
    max_len = 100

    key = jax.random.PRNGKey(0)
    kx, kp = jax.random.split(key)
    x = jax.random.normal(kx, (B, S, E), dtype=jnp.float32)

    pe = make_positional_encoding(E, max_len)[:S, :]
    params = make_params(kp, E)

    # Exact (f32-matmul) path: must match the PyTorch-equivalent reference tightly.
    out_f32 = jax.block_until_ready(
        simple_transformer(x, pe, *params, compute_dtype=jnp.float32))
    ref_f32 = reference(x, pe, *params, compute_dtype=jnp.float32)
    np.testing.assert_allclose(np.asarray(out_f32), np.asarray(ref_f32),
                               atol=1e-4, rtol=1e-4)

    # Fast path (bf16 MXU inputs + approx reciprocal): compare against a
    # matching-precision reference with loosened tolerance.
    out_bf16 = jax.block_until_ready(
        simple_transformer(x, pe, *params, compute_dtype=jnp.bfloat16))
    ref_bf16 = reference(x, pe, *params, compute_dtype=jnp.bfloat16)
    np.testing.assert_allclose(np.asarray(out_bf16), np.asarray(ref_bf16),
                               atol=3e-2, rtol=3e-2)

    print("KERNEL_OK")
</pallas_src>

<mosaic_0001>
module attributes {stable_mosaic.version = 11 : i64} {
  func.func @transformer_kernel(%arg0: i32, %arg1: memref<2x8x32xf32, #tpu.memory_space<vmem>>, %arg2: memref<8x32xf32, #tpu.memory_space<vmem>>, %arg3: memref<32x96xf32, #tpu.memory_space<vmem>>, %arg4: memref<32x32xf32, #tpu.memory_space<vmem>>, %arg5: memref<32x128xf32, #tpu.memory_space<vmem>>, %arg6: memref<128x32xf32, #tpu.memory_space<vmem>>, %arg7: memref<6x32xf32, #tpu.memory_space<vmem>>, %arg8: memref<1x128xf32, #tpu.memory_space<vmem>>, %arg9: memref<2x8x32xf32, #tpu.memory_space<vmem>>) attributes {dimension_semantics = [#tpu.dimension_semantics<parallel>], iteration_bounds = array<i64: 1>, scalar_prefetch = 0 : i64, scratch_operands = 0 : i64, tpu.core_type = #tpu.core_type<tc>, window_params = [{transform_indices = @transform_0, window_bounds = array<i64: 2, 8, 32>}, {pipeline_mode = #tpu.pipeline_mode<synchronous>, transform_indices = @transform_1, window_bounds = array<i64: 8, 32>}, {pipeline_mode = #tpu.pipeline_mode<synchronous>, transform_indices = @transform_2, window_bounds = array<i64: 32, 96>}, {pipeline_mode = #tpu.pipeline_mode<synchronous>, transform_indices = @transform_3, window_bounds = array<i64: 32, 32>}, {pipeline_mode = #tpu.pipeline_mode<synchronous>, transform_indices = @transform_4, window_bounds = array<i64: 32, 128>}, {pipeline_mode = #tpu.pipeline_mode<synchronous>, transform_indices = @transform_5, window_bounds = array<i64: 128, 32>}, {pipeline_mode = #tpu.pipeline_mode<synchronous>, transform_indices = @transform_6, window_bounds = array<i64: 6, 32>}, {pipeline_mode = #tpu.pipeline_mode<synchronous>, transform_indices = @transform_7, window_bounds = array<i64: 1, 128>}, {transform_indices = @transform_8, window_bounds = array<i64: 2, 8, 32>}]} {
    %c0 = arith.constant 0 : index
    %c0_0 = arith.constant 0 : index
    %0 = vector.load %arg7[%c0, %c0_0] : memref<6x32xf32, #tpu.memory_space<vmem>>, vector<6x32xf32>
    %1 = vector.extract_strided_slice %0 {offsets = [0, 0], sizes = [1, 32], strides = [1, 1]} : vector<6x32xf32> to vector<1x32xf32>
    %2 = vector.extract_strided_slice %0 {offsets = [1, 0], sizes = [1, 32], strides = [1, 1]} : vector<6x32xf32> to vector<1x32xf32>
    %3 = vector.extract_strided_slice %0 {offsets = [2, 0], sizes = [1, 32], strides = [1, 1]} : vector<6x32xf32> to vector<1x32xf32>
    %4 = vector.extract_strided_slice %0 {offsets = [3, 0], sizes = [1, 32], strides = [1, 1]} : vector<6x32xf32> to vector<1x32xf32>
    %5 = vector.extract_strided_slice %0 {offsets = [4, 0], sizes = [1, 32], strides = [1, 1]} : vector<6x32xf32> to vector<1x32xf32>
    %6 = vector.extract_strided_slice %0 {offsets = [5, 0], sizes = [1, 32], strides = [1, 1]} : vector<6x32xf32> to vector<1x32xf32>
    %c0_1 = arith.constant 0 : index
    %c0_2 = arith.constant 0 : index
    %c0_3 = arith.constant 0 : index
    %7 = vector.load %arg1[%c0_1, %c0_2, %c0_3] : memref<2x8x32xf32, #tpu.memory_space<vmem>>, vector<2x8x32xf32>
    %cst = arith.constant 2.000000e+00 : f32
    %8 = vector.broadcast %cst : f32 to vector<2x8x32xf32>
    %9 = arith.mulf %8, %7 : vector<2x8x32xf32>
    %c0_4 = arith.constant 0 : index
    %c0_5 = arith.constant 0 : index
    %10 = vector.load %arg2[%c0_4, %c0_5] : memref<8x32xf32, #tpu.memory_space<vmem>>, vector<8x32xf32>
    %11 = vector.shape_cast %10 : vector<8x32xf32> to vector<1x8x32xf32>
    %12 = vector.broadcast %11 : vector<1x8x32xf32> to vector<2x8x32xf32>
    %13 = arith.addf %9, %12 : vector<2x8x32xf32>
    %14 = vector.shape_cast %13 : vector<2x8x32xf32> to vector<16x32xf32>
    %c0_6 = arith.constant 0 : index
    %c0_7 = arith.constant 0 : index
    %15 = vector.load %arg3[%c0_6, %c0_7] : memref<32x96xf32, #tpu.memory_space<vmem>>, vector<32x96xf32>
    %cst_8 = arith.constant dense<0.000000e+00> : vector<16x96xf32>
    %16 = tpu.matmul %14, %15, %cst_8 {dimension_numbers = #tpu.dot_dimension_numbers<[1], [0], [0], [1], [0, 0, 1, 1], [], []>} : vector<16x32xf32>, vector<32x96xf32>, vector<16x96xf32> -> vector<16x96xf32>
    %17 = vector.extract_strided_slice %16 {offsets = [0, 0], sizes = [16, 32], strides = [1, 1]} : vector<16x96xf32> to vector<16x32xf32>
    %18 = vector.shape_cast %17 : vector<16x32xf32> to vector<2x8x32xf32>
    %19 = vector.extract_strided_slice %16 {offsets = [0, 32], sizes = [16, 32], strides = [1, 1]} : vector<16x96xf32> to vector<16x32xf32>
    %20 = vector.shape_cast %19 : vector<16x32xf32> to vector<2x8x32xf32>
    %21 = vector.extract_strided_slice %16 {offsets = [0, 64], sizes = [16, 32], strides = [1, 1]} : vector<16x96xf32> to vector<16x32xf32>
    %22 = vector.shape_cast %21 : vector<16x32xf32> to vector<2x8x32xf32>
    "tpu.trace_start"() <{level = 10 : i32, message = "bqd,bkd->bqk"}> : () -> ()
    %cst_9 = arith.constant dense<0.000000e+00> : vector<2x8x8xf32>
    %23 = tpu.matmul %18, %20, %cst_9 {dimension_numbers = #tpu.dot_dimension_numbers<[2], [2], [1], [1], [0, 0, 0, 1, 1, 1], [0], [0]>} : vector<2x8x32xf32>, vector<2x8x32xf32>, vector<2x8x8xf32> -> vector<2x8x8xf32>
    "tpu.trace_stop"() : () -> ()
    %cst_10 = arith.constant 0.176776692 : f32
    %24 = vector.broadcast %cst_10 : f32 to vector<2x8x8xf32>
    %25 = arith.mulf %23, %24 : vector<2x8x8xf32>
    %cst_11 = arith.constant dense<0xFF800000> : vector<2x8xf32>
    %26 = vector.multi_reduction <maximumf>, %25, %cst_11 [2] : vector<2x8x8xf32> to vector<2x8xf32>
    %27 = vector.shape_cast %26 : vector<2x8xf32> to vector<2x8x1xf32>
    %28 = vector.broadcast %27 : vector<2x8x1xf32> to vector<2x8x8xf32>
    %29 = arith.subf %25, %28 : vector<2x8x8xf32>
    %30 = math.exp %29 : vector<2x8x8xf32>
    %cst_12 = arith.constant dense<0.000000e+00> : vector<2x8xf32>
    %31 = vector.multi_reduction <add>, %30, %cst_12 [2] : vector<2x8x8xf32> to vector<2x8xf32>
    %32 = vector.shape_cast %31 : vector<2x8xf32> to vector<2x8x1xf32>
    %33 = vector.broadcast %32 : vector<2x8x1xf32> to vector<2x8x8xf32>
    %34 = arith.divf %30, %33 : vector<2x8x8xf32>
    "tpu.trace_start"() <{level = 10 : i32, message = "bqk,bkd->bqd"}> : () -> ()
    %cst_13 = arith.constant dense<0.000000e+00> : vector<2x8x32xf32>
    %35 = tpu.matmul %34, %22, %cst_13 {dimension_numbers = #tpu.dot_dimension_numbers<[2], [1], [1], [2], [0, 0, 0, 1, 1, 2], [0], [0]>} : vector<2x8x8xf32>, vector<2x8x32xf32>, vector<2x8x32xf32> -> vector<2x8x32xf32>
    "tpu.trace_stop"() : () -> ()
    %36 = vector.shape_cast %35 : vector<2x8x32xf32> to vector<16x32xf32>
    %c0_14 = arith.constant 0 : index
    %c0_15 = arith.constant 0 : index
    %37 = vector.load %arg4[%c0_14, %c0_15] : memref<32x32xf32, #tpu.memory_space<vmem>>, vector<32x32xf32>
    %cst_16 = arith.constant dense<0.000000e+00> : vector<16x32xf32>
    %38 = tpu.matmul %36, %37, %cst_16 {dimension_numbers = #tpu.dot_dimension_numbers<[1], [0], [0], [1], [0, 0, 1, 1], [], []>} : vector<16x32xf32>, vector<32x32xf32>, vector<16x32xf32> -> vector<16x32xf32>
    %39 = vector.broadcast %1 : vector<1x32xf32> to vector<16x32xf32>
    %40 = arith.addf %38, %39 : vector<16x32xf32>
    %41 = arith.addf %40, %14 : vector<16x32xf32>
    %cst_17 = arith.constant dense<0.000000e+00> : vector<16xf32>
    %42 = vector.multi_reduction <add>, %41, %cst_17 [1] : vector<16x32xf32> to vector<16xf32>
    %43 = vector.shape_cast %42 : vector<16xf32> to vector<16x1xf32>
    %cst_18 = arith.constant 3.200000e+01 : f32
    %44 = vector.broadcast %cst_18 : f32 to vector<16x1xf32>
    %45 = arith.divf %43, %44 : vector<16x1xf32>
    %46 = vector.broadcast %45 : vector<16x1xf32> to vector<16x32xf32>
    %47 = arith.subf %41, %46 : vector<16x32xf32>
    %48 = arith.mulf %47, %47 : vector<16x32xf32>
    %cst_19 = arith.constant dense<0.000000e+00> : vector<16xf32>
    %49 = vector.multi_reduction <add>, %48, %cst_19 [1] : vector<16x32xf32> to vector<16xf32>
    %50 = vector.shape_cast %49 : vector<16xf32> to vector<16x1xf32>
    %cst_20 = arith.constant 3.200000e+01 : f32
    %51 = vector.broadcast %cst_20 : f32 to vector<16x1xf32>
    %52 = arith.divf %50, %51 : vector<16x1xf32>
    %cst_21 = arith.constant 9.99999974E-6 : f32
    %53 = vector.broadcast %cst_21 : f32 to vector<16x1xf32>
    %54 = arith.addf %52, %53 : vector<16x1xf32>
    %55 = math.rsqrt %54 : vector<16x1xf32>
    %56 = vector.broadcast %55 : vector<16x1xf32> to vector<16x32xf32>
    %57 = arith.mulf %47, %56 : vector<16x32xf32>
    %58 = vector.broadcast %2 : vector<1x32xf32> to vector<16x32xf32>
    %59 = arith.mulf %57, %58 : vector<16x32xf32>
    %60 = vector.broadcast %3 : vector<1x32xf32> to vector<16x32xf32>
    %61 = arith.addf %59, %60 : vector<16x32xf32>
    %c0_22 = arith.constant 0 : index
    %c0_23 = arith.constant 0 : index
    %62 = vector.load %arg5[%c0_22, %c0_23] : memref<32x128xf32, #tpu.memory_space<vmem>>, vector<32x128xf32>
    %cst_24 = arith.constant dense<0.000000e+00> : vector<16x128xf32>
    %63 = tpu.matmul %61, %62, %cst_24 {dimension_numbers = #tpu.dot_dimension_numbers<[1], [0], [0], [1], [0, 0, 1, 1], [], []>} : vector<16x32xf32>, vector<32x128xf32>, vector<16x128xf32> -> vector<16x128xf32>
    %c0_25 = arith.constant 0 : index
    %c0_26 = arith.constant 0 : index
    %64 = vector.load %arg8[%c0_25, %c0_26] : memref<1x128xf32, #tpu.memory_space<vmem>>, vector<1x128xf32>
    %65 = vector.broadcast %64 : vector<1x128xf32> to vector<16x128xf32>
    %66 = arith.addf %63, %65 : vector<16x128xf32>
    %cst_27 = arith.constant 0.000000e+00 : f32
    %67 = vector.broadcast %cst_27 : f32 to vector<16x128xf32>
    %68 = arith.maximumf %66, %67 : vector<16x128xf32>
    %c0_28 = arith.constant 0 : index
    %c0_29 = arith.constant 0 : index
    %69 = vector.load %arg6[%c0_28, %c0_29] : memref<128x32xf32, #tpu.memory_space<vmem>>, vector<128x32xf32>
    %cst_30 = arith.constant dense<0.000000e+00> : vector<16x32xf32>
    %70 = tpu.matmul %68, %69, %cst_30 {dimension_numbers = #tpu.dot_dimension_numbers<[1], [0], [0], [1], [0, 0, 1, 1], [], []>} : vector<16x128xf32>, vector<128x32xf32>, vector<16x32xf32> -> vector<16x32xf32>
    %71 = vector.broadcast %4 : vector<1x32xf32> to vector<16x32xf32>
    %72 = arith.addf %70, %71 : vector<16x32xf32>
    %73 = arith.addf %72, %61 : vector<16x32xf32>
    %cst_31 = arith.constant dense<0.000000e+00> : vector<16xf32>
    %74 = vector.multi_reduction <add>, %73, %cst_31 [1] : vector<16x32xf32> to vector<16xf32>
    %75 = vector.shape_cast %74 : vector<16xf32> to vector<16x1xf32>
    %cst_32 = arith.constant 3.200000e+01 : f32
    %76 = vector.broadcast %cst_32 : f32 to vector<16x1xf32>
    %77 = arith.divf %75, %76 : vector<16x1xf32>
    %78 = vector.broadcast %77 : vector<16x1xf32> to vector<16x32xf32>
    %79 = arith.subf %73, %78 : vector<16x32xf32>
    %80 = arith.mulf %79, %79 : vector<16x32xf32>
    %cst_33 = arith.constant dense<0.000000e+00> : vector<16xf32>
    %81 = vector.multi_reduction <add>, %80, %cst_33 [1] : vector<16x32xf32> to vector<16xf32>
    %82 = vector.shape_cast %81 : vector<16xf32> to vector<16x1xf32>
    %cst_34 = arith.constant 3.200000e+01 : f32
    %83 = vector.broadcast %cst_34 : f32 to vector<16x1xf32>
    %84 = arith.divf %82, %83 : vector<16x1xf32>
    %cst_35 = arith.constant 9.99999974E-6 : f32
    %85 = vector.broadcast %cst_35 : f32 to vector<16x1xf32>
    %86 = arith.addf %84, %85 : vector<16x1xf32>
    %87 = math.rsqrt %86 : vector<16x1xf32>
    %88 = vector.broadcast %87 : vector<16x1xf32> to vector<16x32xf32>
    %89 = arith.mulf %79, %88 : vector<16x32xf32>
    %90 = vector.broadcast %5 : vector<1x32xf32> to vector<16x32xf32>
    %91 = arith.mulf %89, %90 : vector<16x32xf32>
    %92 = vector.broadcast %6 : vector<1x32xf32> to vector<16x32xf32>
    %93 = arith.addf %91, %92 : vector<16x32xf32>
    %94 = vector.shape_cast %93 : vector<16x32xf32> to vector<2x8x32xf32>
    %c0_36 = arith.constant 0 : index
    %c0_37 = arith.constant 0 : index
    %c0_38 = arith.constant 0 : index
    %95 = vector.load %arg9[%c0_36, %c0_37, %c0_38] : memref<2x8x32xf32, #tpu.memory_space<vmem>>, vector<2x8x32xf32>
    tpu.vector_store %arg9[%c0_36, %c0_37, %c0_38], %94 {strides = array<i32>} : memref<2x8x32xf32, #tpu.memory_space<vmem>>, vector<2x8x32xf32>,
    return
  }
  func.func @transform_0(%arg0: i32) -> (i32, i32, i32) {
    %c0_i32 = arith.constant 0 : i32
    %c0_i32_0 = arith.constant 0 : i32
    %c0_i32_1 = arith.constant 0 : i32
    return %arg0, %c0_i32, %c0_i32_0 : i32, i32, i32
  }
  func.func @transform_1(%arg0: i32) -> (i32, i32) {
    %c0_i32 = arith.constant 0 : i32
    %c0_i32_0 = arith.constant 0 : i32
    %c0_i32_1 = arith.constant 0 : i32
    return %c0_i32, %c0_i32_0 : i32, i32
  }
  func.func @transform_2(%arg0: i32) -> (i32, i32) {
    %c0_i32 = arith.constant 0 : i32
    %c0_i32_0 = arith.constant 0 : i32
    %c0_i32_1 = arith.constant 0 : i32
    return %c0_i32, %c0_i32_0 : i32, i32
  }
  func.func @transform_3(%arg0: i32) -> (i32, i32) {
    %c0_i32 = arith.constant 0 : i32
    %c0_i32_0 = arith.constant 0 : i32
    %c0_i32_1 = arith.constant 0 : i32
    return %c0_i32, %c0_i32_0 : i32, i32
  }
  func.func @transform_4(%arg0: i32) -> (i32, i32) {
    %c0_i32 = arith.constant 0 : i32
    %c0_i32_0 = arith.constant 0 : i32
    %c0_i32_1 = arith.constant 0 : i32
    return %c0_i32, %c0_i32_0 : i32, i32
  }
  func.func @transform_5(%arg0: i32) -> (i32, i32) {
    %c0_i32 = arith.constant 0 : i32
    %c0_i32_0 = arith.constant 0 : i32
    %c0_i32_1 = arith.constant 0 : i32
    return %c0_i32, %c0_i32_0 : i32, i32
  }
  func.func @transform_6(%arg0: i32) -> (i32, i32) {
    %c0_i32 = arith.constant 0 : i32
    %c0_i32_0 = arith.constant 0 : i32
    %c0_i32_1 = arith.constant 0 : i32
    return %c0_i32, %c0_i32_0 : i32, i32
  }
  func.func @transform_7(%arg0: i32) -> (i32, i32) {
    %c0_i32 = arith.constant 0 : i32
    %c0_i32_0 = arith.constant 0 : i32
    %c0_i32_1 = arith.constant 0 : i32
    return %c0_i32, %c0_i32_0 : i32, i32
  }
  func.func @transform_8(%arg0: i32) -> (i32, i32, i32) {
    %c0_i32 = arith.constant 0 : i32
    %c0_i32_0 = arith.constant 0 : i32
    %c0_i32_1 = arith.constant 0 : i32
    return %arg0, %c0_i32, %c0_i32_0 : i32, i32, i32
  }
}

</mosaic_0001>

<bundles_post_ra>
// kernel: simple_transformer.1
= control target key start
LH: loop header
LB: loop body
LE: loop exit
PB: predicated region body
PF: predicated region fallthrough
CT: control target
= control target key end

     0   :  { %13 = vsyncpa [#allocation3], 0  ;;  %s1632_s0 = inlined_call_operand.hbm [shape: f32[2,8,32], index: 0, kind: input, shape index: {}]   ;;  %s1633_s1 = inlined_call_operand.hbm [shape: f32[8,32], index: 1, kind: input, shape index: {}]   ;;  %s1634_s2 = inlined_call_operand.hbm [shape: f32[32,96], index: 2, kind: input, shape index: {}]   ;;  %s1635_s3 = inlined_call_operand.hbm [shape: f32[32,32], index: 3, kind: input, shape index: {}]   ;;  %s1636_s4 = inlined_call_operand.hbm [shape: f32[32,128], index: 4, kind: input, shape index: {}]   ;;  %s1637_s5 = inlined_call_operand.hbm [shape: f32[128,32], index: 5, kind: input, shape index: {}]   ;;  %s1638_s6 = inlined_call_operand.hbm [shape: f32[6,32], index: 6, kind: input, shape index: {}]   ;;  %s1639_s7 = inlined_call_operand.hbm [shape: f32[1,128], index: 7, kind: input, shape index: {}]   ;;  %s1640_s8 = inlined_call_operand.hbm [shape: f32[2,8,32], index: 8, kind: output, shape index: {}]  }
   0x1   :  { %14 = vsyncpa [#allocation6], 0 }
   0x2   :  { %15 = vsyncpa [#allocation9], 0 }
   0x3   :  { %16 = vsyncpa [#allocation12], 0 }
   0x4   :  { %17 = vsyncpa [#allocation15], 0 }
   0x5   :  { %18 = vsyncpa [#allocation4], 0  ;;  %s1382_s27 = smov [#allocation5]   ;;  %s1172_s9 = scalar_lea.hbm %s1633_s1, 128 }
   0x6   :  { %s37_s28 = sshll.u32 %s1382_s27, 4  ;;  %p1173_p0 = scmp.ne.s32.totalorder %s1633_s1, %s1172_s9  ;;  %s38_s28 = int_to_ptr.vmem [resolvable:$true] %s37_s28 }
   0x7   :  { %p1176_p1 = scmp.lt.u32.totalorder %s1172_s9, %s1633_s1 }
   0x9   :  { %p1178_p2 = pnand %p1176_p1, %p1173_p0 }
   0xb   :  { %1181 = shalt.err (!%p1178_p2)
}
   0xc   :  { %s1182_s14 = scalar_lea.vmem %s38_s28, 128  ;;  %p1187_p4 = scmp.lt.s32.totalorder %s38_s28, %s38_s28 }
   0xd   :  { %p1183_p3 = scmp.ne.s32.totalorder %s38_s28, %s1182_s14  ;;  %p1188_p5 = scmp.lt.s32.totalorder %s1182_s14, %s1182_s14 }
   0xf   :  { %p1189_p6 = por %p1188_p5, %p1187_p4 }
  0x11   :  { %p1190_p7 = pnand %p1189_p6, %p1183_p3 }
  0x13   :  { %1193 = shalt.err (!%p1190_p7)
}
  0x14   :  { %40 = dma.hbm_to_vmem [thread:$0]  %s1633_s1, 128, %s38_s28, [#allocation6]  }
  0x15   :  { %s1383_s17 = smov [#allocation8]   ;;  %s1384_s19 = smov [#allocation11]  }
  0x16   :  { %s58_s18 = sshll.u32 %s1383_s17, 4  ;;  %s82_s20 = sshll.u32 %s1384_s19, 4  ;;  %s59_s18 = int_to_ptr.vmem [resolvable:$true] %s58_s18  ;;  %s83_s20 = int_to_ptr.vmem [resolvable:$true] %s82_s20 }
  0x17   :  { %s1194_s23 = scalar_lea.hbm %s1635_s3, 512 }
  0x18   :  { %p1195_p8 = scmp.ne.s32.totalorder %s1635_s3, %s1194_s23  ;;  %p1198_p9 = scmp.lt.u32.totalorder %s1194_s23, %s1635_s3 }
  0x1a   :  { %p1200_p10 = pnand %p1198_p9, %p1195_p8 }
  0x1c   :  { %1203 = shalt.err (!%p1200_p10)
}
  0x1d   :  { %s1204_s1 = scalar_lea.vmem %s59_s18, 512  ;;  %p1209_p12 = scmp.lt.s32.totalorder %s59_s18, %s59_s18 }
  0x1e   :  { %p1205_p11 = scmp.ne.s32.totalorder %s59_s18, %s1204_s1  ;;  %p1210_p13 = scmp.lt.s32.totalorder %s1204_s1, %s1204_s1 }
  0x20   :  { %p1211_p0 = por %p1210_p13, %p1209_p12 }
  0x22   :  { %p1212_p1 = pnand %p1211_p0, %p1205_p11 }
  0x24   :  { %1215 = shalt.err (!%p1212_p1)
}
  0x25   :  { %s1385_s28 = smov 128   ;;  %s1386_s29 = smov 8  }
  0x26   :  { %64 = dma.hbm_to_vmem [thread:$0]  %s1635_s3, 512, %s59_s18, [#allocation9], %s1385_s28, %s1385_s28, %s1386_s29  }
  0x27   :  { %s1216_s12 = scalar_lea.hbm %s1637_s5, 2048 }
  0x28   :  { %p1217_p2 = scmp.ne.s32.totalorder %s1637_s5, %s1216_s12  ;;  %p1220_p3 = scmp.lt.u32.totalorder %s1216_s12, %s1637_s5 }
  0x2a   :  { %p1222_p4 = pnand %p1220_p3, %p1217_p2 }
  0x2c   :  { %1225 = shalt.err (!%p1222_p4)
}
  0x2d   :  { %s1226_s17 = scalar_lea.vmem %s83_s20, 2048  ;;  %p1231_p6 = scmp.lt.s32.totalorder %s83_s20, %s83_s20 }
  0x2e   :  { %p1227_p5 = scmp.ne.s32.totalorder %s83_s20, %s1226_s17  ;;  %p1232_p7 = scmp.lt.s32.totalorder %s1226_s17, %s1226_s17 }
  0x30   :  { %p1233_p8 = por %p1232_p7, %p1231_p6 }
  0x32   :  { %p1234_p9 = pnand %p1233_p8, %p1227_p5 }
  0x34   :  { %1237 = shalt.err (!%p1234_p9)
}
  0x35   :  { %88 = dma.hbm_to_vmem [thread:$0]  %s1637_s5, 2048, %s83_s20, [#allocation12], %s1385_s28, %s1385_s28, %s1386_s29  }
  0x36   :  { %s1387_s19 = smov [#allocation2]   ;;  %s1388_s22 = smov [#allocation7]  }
  0x37   :  { %s24_s21 = sshll.u32 %s1387_s19, 4  ;;  %s46_s23 = sshll.u32 %s1388_s22, 4  ;;  %s25_s21 = int_to_ptr.vmem [resolvable:$true] %s24_s21  ;;  %s47_s23 = int_to_ptr.vmem [resolvable:$true] %s46_s23 }
  0x38   :  { %s1238_s26 = scalar_lea.hbm %s1632_s0, 256 }
  0x39   :  { %p1239_p10 = scmp.ne.s32.totalorder %s1632_s0, %s1238_s26  ;;  %p1242_p11 = scmp.lt.u32.totalorder %s1238_s26, %s1632_s0 }
  0x3b   :  { %p1244_p12 = pnand %p1242_p11, %p1239_p10 }
  0x3d   :  { %1247 = shalt.err (!%p1244_p12)
}
  0x3e   :  { %s1248_s5 = scalar_lea.vmem %s25_s21, 256  ;;  %p1253_p0 = scmp.lt.s32.totalorder %s25_s21, %s25_s21 }
  0x3f   :  { %p1249_p13 = scmp.ne.s32.totalorder %s25_s21, %s1248_s5  ;;  %p1254_p1 = scmp.lt.s32.totalorder %s1248_s5, %s1248_s5 }
  0x41   :  { %p1255_p2 = por %p1254_p1, %p1253_p0 }
  0x43   :  { %p1256_p3 = pnand %p1255_p2, %p1249_p13 }
  0x45   :  { %1259 = shalt.err (!%p1256_p3)
}
  0x46   :  { %30 = dma.hbm_to_vmem [thread:$0]  %s1632_s0, 256, %s25_s21, [#allocation3], %s1385_s28, %s1385_s28, %s1386_s29  }
  0x47   :  { %s1260_s13 = scalar_lea.hbm %s1634_s2, 512 }
  0x48   :  { %p1261_p4 = scmp.ne.s32.totalorder %s1634_s2, %s1260_s13  ;;  %p1264_p5 = scmp.lt.u32.totalorder %s1260_s13, %s1634_s2 }
  0x4a   :  { %p1266_p6 = pnand %p1264_p5, %p1261_p4 }
  0x4c   :  { %1269 = shalt.err (!%p1266_p6)
}
  0x4d   :  { %s1270_s3 = scalar_lea.vmem %s47_s23, 512  ;;  %p1275_p8 = scmp.lt.s32.totalorder %s47_s23, %s47_s23 }
  0x4e   :  { %p1271_p7 = scmp.ne.s32.totalorder %s47_s23, %s1270_s3  ;;  %p1276_p9 = scmp.lt.s32.totalorder %s1270_s3, %s1270_s3 }
  0x50   :  { %p1277_p10 = por %p1276_p9, %p1275_p8 }
  0x52   :  { %p1278_p11 = pnand %p1277_p10, %p1271_p7 }
  0x54   :  { %1281 = shalt.err (!%p1278_p11)
}
  0x55   :  { %52 = dma.hbm_to_vmem [thread:$0]  %s1634_s2, 512, %s47_s23, [#allocation6], %s1385_s28, %s1385_s28, %s1386_s29  }
  0x56   :  { %s1389_s19 = smov [#allocation10]   ;;  %s1390_s22 = smov [#allocation13]  }
  0x57   :  { %s70_s21 = sshll.u32 %s1389_s19, 4  ;;  %s95_s24 = sshll.u32 %s1390_s22, 4  ;;  %s71_s21 = int_to_ptr.vmem [resolvable:$true] %s70_s21  ;;  %s96_s24 = int_to_ptr.vmem [resolvable:$true] %s95_s24 }
  0x58   :  { %s1282_s27 = scalar_lea.hbm %s1636_s4, 512 }
  0x59   :  { %p1283_p12 = scmp.ne.s32.totalorder %s1636_s4, %s1282_s27  ;;  %p1286_p13 = scmp.lt.u32.totalorder %s1282_s27, %s1636_s4 }
  0x5b   :  { %p1288_p0 = pnand %p1286_p13, %p1283_p12 }
  0x5d   :  { %1291 = shalt.err (!%p1288_p0)
}
  0x5e   :  { %s1292_s2 = scalar_lea.vmem %s71_s21, 512  ;;  %p1297_p2 = scmp.lt.s32.totalorder %s71_s21, %s71_s21 }
  0x5f   :  { %p1293_p1 = scmp.ne.s32.totalorder %s71_s21, %s1292_s2  ;;  %p1298_p3 = scmp.lt.s32.totalorder %s1292_s2, %s1292_s2 }
  0x61   :  { %p1299_p4 = por %p1298_p3, %p1297_p2 }
  0x63   :  { %p1300_p5 = pnand %p1299_p4, %p1293_p1 }
  0x65   :  { %1303 = shalt.err (!%p1300_p5)
}
  0x66   :  { %76 = dma.hbm_to_vmem [thread:$0]  %s1636_s4, 512, %s71_s21, [#allocation9], %s1385_s28, %s1385_s28, %s1386_s29  }
  0x67   :  { %s1304_s12 = scalar_lea.hbm %s1638_s6, 128 }
  0x68   :  { %p1305_p6 = scmp.ne.s32.totalorder %s1638_s6, %s1304_s12  ;;  %p1308_p7 = scmp.lt.u32.totalorder %s1304_s12, %s1638_s6 }
  0x6a   :  { %p1310_p8 = pnand %p1308_p7, %p1305_p6 }
  0x6c   :  { %1313 = shalt.err (!%p1310_p8)
}
  0x6d   :  { %s1314_s17 = scalar_lea.vmem %s96_s24, 128  ;;  %p1319_p10 = scmp.lt.s32.totalorder %s96_s24, %s96_s24 }
  0x6e   :  { %p1315_p9 = scmp.ne.s32.totalorder %s96_s24, %s1314_s17  ;;  %p1320_p11 = scmp.lt.s32.totalorder %s1314_s17, %s1314_s17 }
  0x70   :  { %p1321_p12 = por %p1320_p11, %p1319_p10 }
  0x72   :  { %p1322_p13 = pnand %p1321_p12, %p1315_p9 }
  0x74   :  { %1325 = shalt.err (!%p1322_p13)
}
  0x75   :  { %98 = dma.hbm_to_vmem [thread:$0]  %s1638_s6, 128, %s96_s24, [#allocation12]  }
  0x76   :  { %s1391_s0 = smov [#allocation14]   ;;  %s1326_s22 = scalar_lea.hbm %s1639_s7, 16 }
  0x77   :  { %s105_s18 = sshll.u32 %s1391_s0, 4  ;;  %p1327_p0 = scmp.ne.s32.totalorder %s1639_s7, %s1326_s22  ;;  %s106_s18 = int_to_ptr.vmem [resolvable:$true] %s105_s18 }
  0x78   :  { %p1330_p1 = scmp.lt.u32.totalorder %s1326_s22, %s1639_s7 }
  0x7a   :  { %p1332_p2 = pnand %p1330_p1, %p1327_p0 }
  0x7c   :  { %1335 = shalt.err (!%p1332_p2)
}
  0x7d   :  { %s1336_s30 = scalar_lea.vmem %s106_s18, 16  ;;  %s1340_s6 = scalar_lea.vmem %s106_s18, 32 }
  0x7e   :  { %p1337_p3 = scmp.ne.s32.totalorder %s106_s18, %s1336_s30  ;;  %p1341_p4 = scmp.lt.s32.totalorder %s106_s18, %s106_s18 }
  0x7f   :  { %p1342_p5 = scmp.lt.s32.totalorder %s1340_s6, %s1336_s30 }
  0x81   :  { %p1343_p6 = por %p1342_p5, %p1341_p4 }
  0x83   :  { %p1344_p7 = pnand %p1343_p6, %p1337_p3 }
  0x85   :  { %1347 = shalt.err (!%p1344_p7)
}
  0x86   :  { %108 = dma.hbm_to_vmem [thread:$0]  %s1639_s7, 16, %s106_s18, [#allocation15]  }
  0x87   :  { %1370 = dma.done.wait [#allocation3], 256  }
  0x88   :  { %1371 = vsyncadd [#allocation3], 4294967040 }
  0x89   :  { %1372 = dma.done.wait [#allocation6], 640  }
  0x8a   :  { %1373 = vsyncadd [#allocation6], 4294966656 }
  0x8b   :  { %1374 = dma.done.wait [#allocation9], 1024  }
  0x8c   :  { %1375 = vsyncadd [#allocation9], 4294966272 }
  0x8d   :  { %1376 = dma.done.wait [#allocation12], 2176  }
  0x8e   :  { %1377 = vsyncadd [#allocation12], 4294965120 }
  0x8f   :  { %1378 = dma.done.wait [#allocation15], 16  }
  0x90   :  { %1379 = vsyncadd [#allocation15], 4294967280  ;;  %v141_v0 = vld [vmem:[#allocation7] sm:$0xff]  ;;  %v142_v1 = vld [vmem:[#allocation7 + $0x8] sm:$0xff]  ;;  %vm145_vm0 = vcmask 261120   ;;  %v1392_v13 = vmov 0.0   ;;  %v562_v54 = vlaneseq }
  0x91   :  { %v143_v2 = vld [vmem:[#allocation7 + $0x10] sm:$0xff]  ;;  %v1085_v3 = vpack.c.bf16 %v142_v1, %v141_v0  ;;  %v144_v4 = vld [vmem:[#allocation7 + $0x18] sm:$0xff]  ;;  %v134_v5 = vld [vmem:[#allocation2] sm:$0xff]  ;;  %1018 = vmatprep.subr.mxu0 %v1392_v13  ;;  %vm1393_vm1 = vmmov 0   ;;  %s1394_s7 = smov 96   ;;  %vm383_vm2 = vcmask 64512  }
  0x92   :  { %v135_v6 = vld [vmem:[#allocation2 + $0x8] sm:$0xff]  ;;  %v1089_v7 = vpack.c.bf16 %v144_v4, %v143_v2  ;;  %v136_v8 = vmul.f32 2.0, %v134_v5  ;;  %v138_v9 = vld [vmem:[#allocation5] sm:$0xff]  ;;  %1020 = vmatprep.mubr.msk.f32.mxu0 %vm1393_vm1, %v1392_v13  ;;  %s1395_s5 = smov 64   ;;  %v558_v38 = vld [vmem:[#allocation8] sm:$0xff]  ;;  %v1577_v55 = vshrl.u32 %v562_v54, 7 }
  0x93   :  { %1086 = vmatprep.subr.bf16.mxu1 %v1085_v3  ;;  %v137_v10 = vmul.f32 2.0, %v135_v6  ;;  %v559_v39 = vld [vmem:[#allocation8 + $0x8] sm:$0xff]  ;;  %v560_v47 = vld [vmem:[#allocation8 + $0x10] sm:$0xff]  ;;  %v561_v48 = vld [vmem:[#allocation8 + $0x18] sm:$0xff]  ;;  %s1396_s2 = smov [#allocation16]  }
  0x94   :  { %1088 = vmatpush3.bf16.msra.mxu1 %v1085_v3  ;;  %v1553_v11 = vadd.f32 %v138_v9, %v136_v8  ;;  %v1093_v41 = vpack.c.bf16 %v559_v39, %v558_v38  ;;  %v1097_v49 = vpack.c.bf16 %v561_v48, %v560_v47  ;;  %v564_v56 = vsub.s32 0, %v1577_v55  ;;  %v1580_v57 = vld [vmem:[#allocation13] sm:$0x3f]  ;;  %v795_v38 = vld [vmem:[#allocation11 + $0x68] sm:$0xff]  ;;  %s924_s23 = sshll.u32 %s1396_s2, 4  ;;  %s925_s23 = int_to_ptr.vmem [resolvable:$true] %s924_s23 }
  0x95   :  { %1090 = vmatprep.subr.bf16.mxu1 %v1089_v7  ;;  %v1557_v12 = vadd.f32 %v138_v9, %v137_v10  ;;  %v684_v47 = vsub.s32 2, %v1577_v55  ;;  %s1348_s20 = scalar_lea.vmem %s925_s23, 256  ;;  %p1353_p9 = scmp.lt.s32.totalorder %s925_s23, %s925_s23 }
  0x96   :  { %1005 = vmatprep.mubr.msk.f32.mxu1 %vm145_vm0, %v1553_v11  ;;  %v565_v58 = vrot.slane %v1580_v57, %v564_v56  ;;  %p1349_p8 = scmp.ne.s32.totalorder %s925_s23, %s1348_s20  ;;  %p1354_p10 = scmp.lt.s32.totalorder %s1348_s20, %s1348_s20 }
  0x98   :  { %1092 = vmatpush3.bf16.msra.mxu1 %v1089_v7  ;;  %p1355_p11 = por %p1354_p10, %p1353_p9 }
  0x99   :  { %1008 = vmatprep.subr.mxu1 %v1392_v13 }
  0x9a   :  { %p1356_p12 = pnand %p1355_p11, %p1349_p8 }
  0x9b   :  { %1006 = vmatmul.mubr.msk.f32.vlgmr.msra.gmra.mrb[0].mxu1 %vm145_vm0, %v1557_v12 }
  0x9c   :  { %1010 = vmatprep.mubr.msk.f32.mxu1 %vm1393_vm1, %v1392_v13 }
 0x16e   :  { %v1007_v14 = vpop.f32.mrb[0].mxu1 }
 0x16f   :  { %v218_v15 = vpop.f32.mrb[1].mxu1 }
 0x170   :  { %228 = vrot.lane.b32.xlu0 %v218_v15, %s1394_s7 }
 0x174   :  { %305 = vrot.lane.b32.xlu0 %v1007_v14, %s1394_s7 }
 0x1e2   :  { %v229_v16 = vpop.permute.xlu0 %228 }
 0x1e3   :  { %1009 = vmatpush3.xpose.msk.msra.mxu1 %vm145_vm0, %v229_v16  ;;  %v690_v16 = vld [vmem:[#allocation10 + $0x10] sm:$0xff] }
 0x1e4   :  { %1013 = vmatprep.subr.mxu1 %v1392_v13 }
 0x1e6   :  { %1011 = vmatmul.mubr.msk.f32.vlgmr.msra.gmra.mrb[2].mxu1 %vm145_vm0, %v218_v15  ;;  %v306_v17 = vpop.permute.xlu0 %305 }
 0x1e7   :  { %1014 = vmatpush3.xpose.msk.msra.mxu1 %vm145_vm0, %v306_v17  ;;  %1015 = vmatprep.mubr.msk.f32.mxu1 %vm1393_vm1, %v1392_v13  ;;  %v691_v17 = vld [vmem:[#allocation10 + $0x18] sm:$0xff] }
 0x1e8   :  { %1023 = vmatprep.subr.mxu1 %v1392_v13 }
 0x1ea   :  { %1016 = vmatmul.mubr.msk.f32.vlgmr.msra.gmra.mrb[4].mxu1 %vm145_vm0, %v1007_v14 }
 0x1eb   :  { %1025 = vmatprep.mubr.msk.f32.mxu1 %vm1393_vm1, %v1392_v13  ;;  %v688_v13 = vld [vmem:[#allocation10] sm:$0xff] }
 0x2b9   :  { %v300_v18 = vpop.f32.mrb[2].mxu1 }
 0x2ba   :  { %v381_v19 = vmul.f32 0.17677669, %v300_v18  ;;  %v1012_v20 = vpop.f32.mrb[3].mxu1  ;;  %v1105_v18 = vpack.c.bf16 %v691_v17, %v690_v16 }
 0x2bb   :  { %v783_v20 = vld [vmem:[#allocation11 + $0x8] sm:$0xff] }
 0x2bc   :  { %v384_v21 = vsel %vm383_vm2, %v381_v19, -inf }
 0x2bd   :  { %385 = vmax.xlane.f32.xlu1 %v384_v21  ;;  %v377_v22 = vpop.f32.mrb[4].mxu1  ;;  %v784_v21 = vld [vmem:[#allocation11 + $0x10] sm:$0xff] }
 0x2be   :  { %v382_v23 = vmul.f32 0.17677669, %v377_v22  ;;  %v1017_v24 = vpop.f32.mrb[5].mxu1 }
 0x2c0   :  { %v387_v25 = vsel %vm383_vm2, %v382_v23, -inf }
 0x2c1   :  { %388 = vmax.xlane.f32.xlu1 %v387_v25  ;;  %v786_v25 = vld [vmem:[#allocation11 + $0x20] sm:$0xff] }
 0x2d2   :  { %406 = vrot.lane.b32.xlu1 %v218_v15, %s1395_s5 }
 0x34a   :  { %v386_v26 = vpop.xlane.xlu1 %385 }
 0x34b   :  { %v390_v27 = vsub.f32 %v381_v19, %v386_v26  ;;  %v782_v19 = vld [vmem:[#allocation11] sm:$0xff]  ;;  %v787_v26 = vld [vmem:[#allocation11 + $0x28] sm:$0xff] }
 0x34c   :  { %v1109_v22 = vpack.c.bf16 %v783_v20, %v782_v19 }
 0x34d   :  { %v392_v28 = vmul.f32 1.442695, %v390_v27  ;;  %v1117_v27 = vpack.c.bf16 %v787_v26, %v786_v25 }
 0x34e   :  { %v389_v29 = vpop.xlane.xlu1 %388 }
 0x34f   :  { %1156 = vpow2.f32 %v392_v28  ;;  %v391_v30 = vsub.f32 %v382_v23, %v389_v29  ;;  %v785_v23 = vld [vmem:[#allocation11 + $0x18] sm:$0xff]  ;;  %v788_v28 = vld [vmem:[#allocation11 + $0x30] sm:$0xff] }
 0x350   :  { %v1113_v24 = vpack.c.bf16 %v785_v23, %v784_v21  ;;  %v789_v29 = vld [vmem:[#allocation11 + $0x38] sm:$0xff] }
 0x351   :  { %v394_v31 = vmul.f32 1.442695, %v391_v30  ;;  %v1121_v30 = vpack.c.bf16 %v789_v29, %v788_v28 }
 0x352   :  { %v407_v32 = vpop.permute.xlu1 %406 }
 0x353   :  { %1158 = vpow2.f32 %v394_v31  ;;  %1019 = vmatpush3.msra.mxu0 %v407_v32  ;;  %v790_v31 = vld [vmem:[#allocation11 + $0x40] sm:$0xff]  ;;  %v791_v32 = vld [vmem:[#allocation11 + $0x48] sm:$0xff] }
 0x354   :  { %1110 = vmatprep.subr.bf16.mxu0 %v1109_v22 }
 0x359   :  { %v1157_v33 = vpop.eup %1156 }
 0x35a   :  { %v396_v34 = vsel %vm383_vm2, %v1157_v33, 0.0 }
 0x35b   :  { %397 = vadd.xlane.f32.xlu0 %v396_v34  ;;  %v792_v34 = vld [vmem:[#allocation11 + $0x50] sm:$0xff] }
 0x35d   :  { %v1159_v35 = vpop.eup %1158 }
 0x35e   :  { %v399_v36 = vsel %vm383_vm2, %v1159_v35, 0.0 }
 0x35f   :  { %400 = vadd.xlane.f32.xlu1 %v399_v36 }
 0x370   :  { %482 = vrot.lane.b32.xlu1 %v1007_v14, %s1395_s5  ;;  %v689_v14 = vld [vmem:[#allocation10 + $0x8] sm:$0xff] }
 0x371   :  { %v1101_v15 = vpack.c.bf16 %v689_v14, %v688_v13 }
 0x3e8   :  { %v398_v37 = vpop.xlane.xlu0 %397 }
 0x3e9   :  { %1160 = vrcp.f32 %v398_v37  ;;  %v794_v37 = vld [vmem:[#allocation11 + $0x60] sm:$0xff] }
 0x3ea   :  { %v1133_v39 = vpack.c.bf16 %v795_v38, %v794_v37 }
 0x3ec   :  { %v401_v40 = vpop.xlane.xlu1 %400 }
 0x3ed   :  { %1162 = vrcp.f32 %v401_v40 }
 0x3f0   :  { %v483_v42 = vpop.permute.xlu1 %482 }
 0x3f1   :  { %1024 = vmatpush3.msra.mxu1 %v483_v42 }
 0x3f2   :  { %1094 = vmatprep.subr.bf16.mxu1 %v1093_v41 }
 0x3f3   :  { %v1161_v43 = vpop.eup %1160 }
 0x3f4   :  { %v403_v44 = vmul.f32 %v1161_v43, %v1157_v33  ;;  %v1125_v33 = vpack.c.bf16 %v791_v32, %v790_v31  ;;  %v907_v32 = vsub.s32 4, %v1577_v55 }
 0x3f6   :  { %1021 = vmatmul.mubr.msk.f32.vlgmr.msra.gmra.mrb[0].mxu0 %vm383_vm2, %v403_v44 }
 0x3f7   :  { %v1163_v45 = vpop.eup %1162  ;;  %1112 = vmatpush3.bf16.msra.mxu0 %v1109_v22 }
 0x3f8   :  { %v405_v46 = vmul.f32 %v1163_v45, %v1159_v35  ;;  %1114 = vmatprep.subr.bf16.mxu0 %v1113_v24  ;;  %v793_v35 = vld [vmem:[#allocation11 + $0x58] sm:$0xff] }
 0x3f9   :  { %v1129_v36 = vpack.c.bf16 %v793_v35, %v792_v34  ;;  %v908_v34 = vrot.slane %v1580_v57, %v907_v32 }
 0x3fa   :  { %1026 = vmatmul.mubr.msk.f32.vlgmr.msra.gmra.mrb[6].mxu1 %vm383_vm2, %v405_v46  ;;  %v678_v46 = vsub.s32 1, %v1577_v55 }
 0x3fb   :  { %1096 = vmatpush3.bf16.msra.mxu1 %v1093_v41  ;;  %1116 = vmatpush3.bf16.msra.mxu0 %v1113_v24 }
 0x3fc   :  { %1098 = vmatprep.subr.bf16.mxu1 %v1097_v49  ;;  %1118 = vmatprep.subr.bf16.mxu0 %v1117_v27  ;;  %v679_v48 = vrot.slane %v1580_v57, %v678_v46 }
 0x3ff   :  { %1100 = vmatpush3.bf16.msra.mxu1 %v1097_v49  ;;  %1120 = vmatpush3.bf16.msra.mxu0 %v1117_v27 }
 0x400   :  { %1102 = vmatprep.subr.bf16.mxu1 %v1101_v15  ;;  %1122 = vmatprep.subr.bf16.mxu0 %v1121_v30 }
 0x403   :  { %1124 = vmatpush3.bf16.msra.mxu0 %v1121_v30 }
 0x404   :  { %1126 = vmatprep.subr.bf16.mxu0 %v1125_v33 }
 0x407   :  { %1128 = vmatpush3.bf16.msra.mxu0 %v1125_v33  ;;  %v913_v33 = vsub.s32 5, %v1577_v55 }
 0x408   :  { %1130 = vmatprep.subr.bf16.mxu0 %v1129_v36 }
 0x409   :  { %v914_v37 = vrot.slane %v1580_v57, %v913_v33 }
 0x40b   :  { %1132 = vmatpush3.bf16.msra.mxu0 %v1129_v36 }
 0x40c   :  { %1134 = vmatprep.subr.bf16.mxu0 %v1133_v39 }
 0x40f   :  { %1136 = vmatpush3.bf16.msra.mxu0 %v1133_v39 }
 0x4c9   :  { %v478_v50 = vpop.f32.mrb[0].mxu0 }
 0x4ca   :  { %v1022_v51 = vpop.f32.mrb[1].mxu0  ;;  %1036 = vmatprep.mubr.msk.f32.mxu1 %vm145_vm0, %v478_v50 }
 0x4cb   :  { %v685_v51 = vrot.slane %v1580_v57, %v684_v47 }
 0x4cd   :  { %v554_v52 = vpop.f32.mrb[6].mxu1 }
 0x4ce   :  { %v1027_v53 = vpop.f32.mrb[7].mxu1  ;;  %1037 = vmatmul.mubr.msk.f32.vlgmr.msra.gmra.mrb[8].mxu1 %vm145_vm0, %v554_v52 }
 0x4cf   :  { %1104 = vmatpush3.bf16.msra.mxu1 %v1101_v15 }
 0x4d0   :  { %1106 = vmatprep.subr.bf16.mxu1 %v1105_v18 }
 0x4d3   :  { %1108 = vmatpush3.bf16.msra.mxu1 %v1105_v18 }
 0x5a1   :  { %v1038_v59 = vpop.f32.mrb[8].mxu1 }
 0x5a2   :  { %v644_v60 = vadd.f32 %v1038_v59, %v565_v58  ;;  %v638_v61 = vpop.f32.mrb[9].mxu1 }
 0x5a3   :  { %v639_v62 = vadd.f32 %v638_v61, %v565_v58  ;;  %v797_v61 = vld [vmem:[#allocation11 + $0x78] sm:$0xff] }
 0x5a4   :  { %v648_v63 = vadd.f32 %v644_v60, %v1557_v12  ;;  %v796_v60 = vld [vmem:[#allocation11 + $0x70] sm:$0xff] }
 0x5a5   :  { %v647_v0 = vadd.f32 %v639_v62, %v1553_v11  ;;  %v1137_v62 = vpack.c.bf16 %v797_v61, %v796_v60 }
 0x5a6   :  { %v652_v1 = vsel %vm145_vm0, %v648_v63, 0.0 }
 0x5a7   :  { %653 = vadd.xlane.f32.xlu0 %v652_v1  ;;  %v649_v2 = vsel %vm145_vm0, %v647_v0, 0.0  ;;  %1138 = vmatprep.subr.bf16.mxu0 %v1137_v62 }
 0x5a8   :  { %650 = vadd.xlane.f32.xlu1 %v649_v2  ;;  %1140 = vmatpush3.bf16.msra.mxu0 %v1137_v62 }
 0x634   :  { %v654_v3 = vpop.xlane.xlu0 %653 }
 0x635   :  { %v657_v4 = vmul.f32 0.03125, %v654_v3  ;;  %v651_v5 = vpop.xlane.xlu1 %650 }
 0x636   :  { %v656_v6 = vmul.f32 0.03125, %v651_v5 }
 0x637   :  { %v1587_v7 = vsub.f32 %v648_v63, %v657_v4  ;;  %v950_v63 = vld [vmem:[#allocation14] ss:$0 sm:$0xff] }
 0x638   :  { %v1589_v8 = vsub.f32 %v647_v0, %v656_v6  ;;  %v800_v6 = vsub.s32 3, %v1577_v55 }
 0x639   :  { %v661_v11 = vmul.f32 %v1587_v7, %v1587_v7 }
 0x63a   :  { %v660_v9 = vmul.f32 %v1589_v8, %v1589_v8 }
 0x63b   :  { %v665_v12 = vsel %vm145_vm0, %v661_v11, 0.0 }
 0x63c   :  { %v662_v10 = vsel %vm145_vm0, %v660_v9, 0.0 }
 0x63d   :  { %663 = vadd.xlane.f32.xlu0 %v662_v10 }
 0x641   :  { %666 = vadd.xlane.f32.xlu0 %v665_v12 }
 0x6ca   :  { %v664_v40 = vpop.xlane.xlu0 %663 }
 0x6cb   :  { %v668_v41 = vmul.f32 0.03125, %v664_v40 }
 0x6cd   :  { %v670_v42 = vadd.f32 1e-05, %v668_v41 }
 0x6ce   :  { %v667_v43 = vpop.xlane.xlu0 %666 }
 0x6cf   :  { %1164 = vrsqrt.f32 %v670_v42  ;;  %v669_v44 = vmul.f32 0.03125, %v667_v43 }
 0x6d1   :  { %v671_v45 = vadd.f32 1e-05, %v669_v44 }
 0x6d3   :  { %1166 = vrsqrt.f32 %v671_v45 }
 0x6d9   :  { %v1165_v49 = vpop.eup %1164 }
 0x6da   :  { %v674_v50 = vmul.f32 %v1165_v49, %v1589_v8 }
 0x6dc   :  { %v680_v52 = vmul.f32 %v679_v48, %v674_v50 }
 0x6dd   :  { %v1167_v53 = vpop.eup %1166 }
 0x6de   :  { %v675_v54 = vmul.f32 %v1167_v53, %v1587_v7  ;;  %v686_v56 = vadd.f32 %v685_v51, %v680_v52  ;;  %v801_v7 = vrot.slane %v1580_v57, %v800_v6 }
 0x6e0   :  { %v681_v58 = vmul.f32 %v679_v48, %v675_v54  ;;  %1047 = vmatprep.mubr.msk.f32.mxu1 %vm145_vm0, %v686_v56 }
 0x6e2   :  { %v687_v59 = vadd.f32 %v685_v51, %v681_v58 }
 0x6e4   :  { %1048 = vmatmul.mubr.msk.f32.vlgmr.msra.gmra.mrb[10].mxu1 %vm145_vm0, %v687_v59 }
 0x7b7   :  { %v1049_v0 = vpop.f32.mrb[10].mxu1 }
 0x7b8   :  { %v777_v1 = vadd.f32 %v1049_v0, %v950_v63  ;;  %v771_v2 = vpop.f32.mrb[11].mxu1 }
 0x7b9   :  { %v772_v3 = vadd.f32 %v950_v63, %v771_v2 }
 0x7ba   :  { %v781_v5 = vmax.f32 %v777_v1, 0.0 }
 0x7bb   :  { %v780_v4 = vmax.f32 %v772_v3, 0.0 }
 0x7bd   :  { %1082 = vmatprep.mubr.f32.mxu0 %v780_v4 }
 0x7be   :  { %1083 = vmatmul.mubr.f32.vlgmr.msra.gmra.mrb[2].mxu0 %v781_v5 }
 0x891   :  { %v1084_v8 = vpop.f32.mrb[2].mxu0 }
 0x892   :  { %v868_v9 = vpop.f32.mrb[3].mxu0  ;;  %v874_v10 = vadd.f32 %v1084_v8, %v801_v7 }
 0x893   :  { %v869_v11 = vadd.f32 %v868_v9, %v801_v7 }
 0x894   :  { %v878_v14 = vadd.f32 %v874_v10, %v687_v59 }
 0x895   :  { %v877_v12 = vadd.f32 %v869_v11, %v686_v56 }
 0x896   :  { %v882_v15 = vsel %vm145_vm0, %v878_v14, 0.0 }
 0x897   :  { %v879_v13 = vsel %vm145_vm0, %v877_v12, 0.0 }
 0x898   :  { %880 = vadd.xlane.f32.xlu0 %v879_v13 }
 0x89c   :  { %883 = vadd.xlane.f32.xlu0 %v882_v15 }
 0x925   :  { %v881_v16 = vpop.xlane.xlu0 %880 }
 0x926   :  { %v885_v17 = vmul.f32 0.03125, %v881_v16 }
 0x928   :  { %v887_v18 = vsub.f32 %v877_v12, %v885_v17 }
 0x929   :  { %v884_v19 = vpop.xlane.xlu0 %883 }
 0x92a   :  { %v886_v20 = vmul.f32 0.03125, %v884_v19  ;;  %v889_v21 = vmul.f32 %v887_v18, %v887_v18 }
 0x92c   :  { %v888_v22 = vsub.f32 %v878_v14, %v886_v20  ;;  %v891_v23 = vsel %vm145_vm0, %v889_v21, 0.0 }
 0x92d   :  { %892 = vadd.xlane.f32.xlu0 %v891_v23 }
 0x92e   :  { %v890_v24 = vmul.f32 %v888_v22, %v888_v22 }
 0x930   :  { %v894_v25 = vsel %vm145_vm0, %v890_v24, 0.0 }
 0x931   :  { %895 = vadd.xlane.f32.xlu0 %v894_v25 }
 0x9ba   :  { %v893_v26 = vpop.xlane.xlu0 %892 }
 0x9bb   :  { %v897_v27 = vmul.f32 0.03125, %v893_v26 }
 0x9bd   :  { %v899_v28 = vadd.f32 1e-05, %v897_v27 }
 0x9be   :  { %v896_v29 = vpop.xlane.xlu0 %895 }
 0x9bf   :  { %1168 = vrsqrt.f32 %v899_v28  ;;  %v898_v30 = vmul.f32 0.03125, %v896_v29 }
 0x9c1   :  { %v900_v31 = vadd.f32 1e-05, %v898_v30 }
 0x9c3   :  { %1170 = vrsqrt.f32 %v900_v31 }
 0x9c9   :  { %v1169_v35 = vpop.eup %1168 }
 0x9ca   :  { %v903_v36 = vmul.f32 %v1169_v35, %v887_v18 }
 0x9cc   :  { %v909_v38 = vmul.f32 %v908_v34, %v903_v36 }
 0x9cd   :  { %v1171_v39 = vpop.eup %1170 }
 0x9ce   :  { %v904_v40 = vmul.f32 %v1171_v39, %v888_v22  ;;  %v915_v41 = vadd.f32 %v914_v37, %v909_v38 }
 0x9d0   :  { %v910_v42 = vmul.f32 %v908_v34, %v904_v40  ;;  %917 = vst.msk [vmem:[#allocation16] sm:$0xff] %vm145_vm0, %v915_v41 }
 0x9d2   :  { %v916_v43 = vadd.f32 %v914_v37, %v910_v42 }
 0x9d4   :  { %918 = vst.msk [vmem:[#allocation16 + $0x8] sm:$0xff] %vm145_vm0, %v916_v43 }
 0x9d5   :  { %1359 = shalt.err (!%p1356_p12)
}
 0x9d6   :  { %s1360_s12 = scalar_lea.hbm %s1640_s8, 256 }
 0x9d7   :  { %p1361_p13 = scmp.ne.s32.totalorder %s1640_s8, %s1360_s12  ;;  %p1364_p0 = scmp.lt.u32.totalorder %s1360_s12, %s1640_s8 }
 0x9d9   :  { %p1366_p1 = pnand %p1364_p0, %p1361_p13 }
 0x9db   :  { %1369 = shalt.err (!%p1366_p1)
}
 0x9dc   :  { %930 = dma.vmem_to_hbm [thread:$0]  %s925_s23, 256, %s1640_s8, [#allocation4], %s1385_s28, %s1385_s28, %s1386_s29  }
 0x9dd   :  { %1380 = dma.done.wait [#allocation4], 256  }
 0x9de   :  { %1381 = vsyncadd [#allocation4], 4294967040 }
 0x9df   :  { %934 = vsyncpa [#allocation3], 1 }
 0x9e0   :  { %935 = vsyncpa [#allocation6], 1 }
 0x9e1   :  { %936 = vsyncpa [#allocation9], 1 }
 0x9e2   :  { %937 = vsyncpa [#allocation12], 1 }
 0x9e3   :  { %938 = vsyncpa [#allocation15], 1 }
 0x9e4   :  { %939 = vsyncpa [#allocation4], 1 }

</bundles_post_ra>
